<compile_context>
chip_gen: v7x
topology: tpu7x:2x2x1
jax: 0.10.0
libtpu: 0.0.40
codegen_flags: <defaults>
</compile_context>

<pallas_src>
import jax
import jax.numpy as jnp
from jax import lax
from jax.experimental import pallas as pl
from jax.experimental.pallas import tpu as pltpu
import numpy as np


# dot_general dimension numbers for 2-D operands.
_TRANS_B = (((1,), (1,)), ((), ()))   # contract last dim of both: A @ B.T
_STD = (((1,), (0,)), ((), ()))       # standard A @ B


def _make_mha_kernel(num_heads: int, seq: int, d_k: int):
    def kernel(wq_ref, wk_ref, wv_ref, x_ref, o_ref, out_ref,
               q_scr, k_scr, v_scr, attn_scr):
        h = pl.program_id(0)

        # ---- first grid step: full-width projections (fills the MXU lanes with
        #      d_model instead of d_k), scattered per head into persistent scratch ----
        @pl.when(h == 0)
        def _project():
            x_v = x_ref[...]                                           # (seq, d_in) bf16
            q_all = lax.dot_general(x_v, wq_ref[...], _TRANS_B,        # scale pre-folded
                                    preferred_element_type=jnp.float32).astype(jnp.bfloat16)
            k_all = lax.dot_general(x_v, wk_ref[...], _TRANS_B,
                                    preferred_element_type=jnp.float32).astype(jnp.bfloat16)
            v_all = lax.dot_general(x_v, wv_ref[...], _TRANS_B,
                                    preferred_element_type=jnp.float32).astype(jnp.bfloat16)
            # One-time static scatter into (H, seq, d_k) scratch so per-head access
            # later is a cheap leading-dim index (no dynamic lane slicing per step).
            for hh in range(num_heads):
                sl = slice(hh * d_k, (hh + 1) * d_k)
                q_scr[hh] = q_all[:, sl]
                k_scr[hh] = k_all[:, sl]
                v_scr[hh] = v_all[:, sl]

        # ---- per-head attention: only this head's (seq, seq) intermediates live ----
        q_h = q_scr[h]                                                 # (seq, d_k) bf16
        k_h = k_scr[h]                                                 # (seq, d_k) bf16
        v_h = v_scr[h]                                                 # (seq, d_k) bf16

        s = lax.dot_general(q_h, k_h, _TRANS_B,
                            preferred_element_type=jnp.float32)        # (seq, seq) f32

        # Single-select mask, torch.triu convention (query i attends keys j >= i).
        row = lax.broadcasted_iota(jnp.int32, (seq, seq), 0)
        col = lax.broadcasted_iota(jnp.int32, (seq, seq), 1)
        s = jnp.where(col >= row, s, jnp.float32(-jnp.inf))

        # Numerically stable softmax in f32; reciprocal on the EUP slot.
        m = jnp.max(s, axis=-1, keepdims=True)
        e = jnp.exp(s - m)
        denom = jnp.sum(e, axis=-1, keepdims=True)
        p = (e * pl.reciprocal(denom, approx=True)).astype(jnp.bfloat16)

        # attn_h[i, d] = sum_j p[i, j] * v_h[j, d]   -> (seq, d_k), stored in f32 scratch.
        attn_scr[h] = lax.dot_general(p, v_h, _STD,
                                      preferred_element_type=jnp.float32)

        # ---- last grid step: ONE full-width output matmul over the (H*seq) axis ----
        @pl.when(h == pl.num_programs(0) - 1)
        def _finalize():
            attn_flat = attn_scr[...].reshape(num_heads * seq, d_k).astype(jnp.bfloat16)
            out_ref[...] = lax.dot_general(o_ref[...], attn_flat, _STD,
                                           preferred_element_type=jnp.float32)

    return kernel


def causal_mha_pallas(Q, K, V, O, x, num_heads):
    d_model, d_in = Q.shape
    seq = x.shape[0]
    d_k = d_model // num_heads
    m_out = O.shape[0]
    assert O.shape[1] == num_heads * seq, "O must be (m, num_heads*seq) for `O @ attn`"

    # Fold 1/sqrt(d_k) into the Q weight (d_model*d_in mults, once) instead of scaling
    # activations per head in-kernel.  TODO(synk): do this once at module init.
    scale = 1.0 / (d_k ** 0.5)
    wq = (Q * scale).astype(jnp.bfloat16)        # (d_model, d_in)
    wk = K.astype(jnp.bfloat16)                  # (d_model, d_in)
    wv = V.astype(jnp.bfloat16)                  # (d_model, d_in)
    x_bf = x.astype(jnp.bfloat16)                # (seq, d_in)
    o_bf = O.astype(jnp.bfloat16)                # (m_out, H*seq) — native layout, no copy

    kernel = _make_mha_kernel(num_heads, seq, d_k)

    out = pl.pallas_call(
        kernel,
        out_shape=jax.ShapeDtypeStruct((m_out, d_k), jnp.float32),
        grid_spec=pltpu.PrefetchScalarGridSpec(
            num_scalar_prefetch=0,
            grid=(num_heads,),
            # Whole-array blocks with constant index maps: fetched once, resident
            # across the head grid (the per-head working set is bounded by scratch).
            in_specs=[
                pl.BlockSpec((d_model, d_in), lambda h: (0, 0)),           # Wq (scaled)
                pl.BlockSpec((d_model, d_in), lambda h: (0, 0)),           # Wk
                pl.BlockSpec((d_model, d_in), lambda h: (0, 0)),           # Wv
                pl.BlockSpec((seq, d_in), lambda h: (0, 0)),               # x
                pl.BlockSpec((m_out, num_heads * seq), lambda h: (0, 0)),  # O (native)
            ],
            out_specs=pl.BlockSpec((m_out, d_k), lambda h: (0, 0)),
            scratch_shapes=[
                pltpu.VMEM((num_heads, seq, d_k), jnp.bfloat16),   # q per head
                pltpu.VMEM((num_heads, seq, d_k), jnp.bfloat16),   # k per head
                pltpu.VMEM((num_heads, seq, d_k), jnp.bfloat16),   # v per head
                pltpu.VMEM((num_heads, seq, d_k), jnp.float32),    # attn accumulator
            ],
        ),
        compiler_params=pltpu.CompilerParams(
            dimension_semantics=("arbitrary",)),
    )(wq, wk, wv, x_bf, o_bf)

    return out   # (m_out, d_k) — module's native orientation, no wrapper transpose


def causal_mha_reference(Q, K, V, O, x, num_heads):
    """Faithful f32 re-implementation of the PyTorch forward (for validation)."""
    d_model, d_in = Q.shape
    d_k = d_model // num_heads
    seq = x.shape[0]
    w = jnp.stack([Q, K, V], 0).reshape(3, num_heads, d_k, d_in)
    proj = jnp.einsum('qhdi,si->qhsd', w, x, precision='highest')
    q, k, v = proj[0], proj[1], proj[2]
    scores = jnp.einsum('hqd,hkd->hqk', q, k, precision='highest') / (d_k ** 0.5)
    mask = jnp.triu(jnp.ones((seq, seq), jnp.float32))
    scores = mask[None] * scores
    scores = jnp.where(scores == 0.0, -jnp.inf, scores)
    scores = scores - scores.max(-1, keepdims=True)
    p = jnp.exp(scores) / jnp.exp(scores).sum(-1, keepdims=True)
    attn = jnp.einsum('hqk,hkd->hqd', p, v, precision='highest')    # (H, seq, d_k)
    return jnp.dot(O, attn.reshape(num_heads * seq, d_k), precision='highest')


if __name__ == "__main__":
    # Small shapes consistent with the forward: O is (d_model, num_heads*seq) so that
    # `O @ rearrange(attn, 'h s d -> (h s) d')` is conformable.
    d_model, num_heads, d_in, seq = 32, 4, 32, 8

    key = jax.random.PRNGKey(0)
    kq, kk, kv, ko, kx = jax.random.split(key, 5)
    Q = jax.random.normal(kq, (d_model, d_in), jnp.float32) * 0.1
    K = jax.random.normal(kk, (d_model, d_in), jnp.float32) * 0.1
    V = jax.random.normal(kv, (d_model, d_in), jnp.float32) * 0.1
    O = jax.random.normal(ko, (d_model, num_heads * seq), jnp.float32) * 0.1
    x = jax.random.normal(kx, (seq, d_in), jnp.float32)

    out = causal_mha_pallas(Q, K, V, O, x, num_heads)
    out = jax.block_until_ready(out)

    ref = causal_mha_reference(Q, K, V, O, x, num_heads)
    # bf16 MXU operands + approx reciprocal vs. an f32-highest reference.
    np.testing.assert_allclose(np.asarray(out), np.asarray(ref), rtol=2e-2, atol=2e-2)

    print("KERNEL_OK")
</pallas_src>

<mosaic_0001>
module attributes {stable_mosaic.version = 11 : i64} {
  func.func @kernel(%arg0: i32, %arg1: memref<32x32xbf16, #tpu.memory_space<vmem>>, %arg2: memref<32x32xbf16, #tpu.memory_space<vmem>>, %arg3: memref<32x32xbf16, #tpu.memory_space<vmem>>, %arg4: memref<8x32xbf16, #tpu.memory_space<vmem>>, %arg5: memref<32x32xbf16, #tpu.memory_space<vmem>>, %arg6: memref<32x8xf32, #tpu.memory_space<vmem>>, %arg7: memref<4x8x8xbf16, #tpu.memory_space<vmem>>, %arg8: memref<4x8x8xbf16, #tpu.memory_space<vmem>>, %arg9: memref<4x8x8xbf16, #tpu.memory_space<vmem>>, %arg10: memref<4x8x8xf32, #tpu.memory_space<vmem>>) attributes {dimension_semantics = [#tpu.dimension_semantics<arbitrary>], iteration_bounds = array<i64: 4>, scalar_prefetch = 0 : i64, scratch_operands = 4 : i64, tpu.core_type = #tpu.core_type<tc>, window_params = [{pipeline_mode = #tpu.pipeline_mode<synchronous>, transform_indices = @transform_0, window_bounds = array<i64: 32, 32>}, {pipeline_mode = #tpu.pipeline_mode<synchronous>, transform_indices = @transform_1, window_bounds = array<i64: 32, 32>}, {pipeline_mode = #tpu.pipeline_mode<synchronous>, transform_indices = @transform_2, window_bounds = array<i64: 32, 32>}, {pipeline_mode = #tpu.pipeline_mode<synchronous>, transform_indices = @transform_3, window_bounds = array<i64: 8, 32>}, {pipeline_mode = #tpu.pipeline_mode<synchronous>, transform_indices = @transform_4, window_bounds = array<i64: 32, 32>}, {pipeline_mode = #tpu.pipeline_mode<synchronous>, transform_indices = @transform_5, window_bounds = array<i64: 32, 8>}]} {
    %c0_i32 = arith.constant 0 : i32
    %0 = arith.cmpi eq, %arg0, %c0_i32 : i32
    %1 = arith.extui %0 : i1 to i32
    %c0_i32_0 = arith.constant 0 : i32
    %2 = arith.cmpi ne, %1, %c0_i32_0 : i32
    scf.if %2 {
      %c0_13 = arith.constant 0 : index
      %c0_14 = arith.constant 0 : index
      %37 = vector.load %arg4[%c0_13, %c0_14] : memref<8x32xbf16, #tpu.memory_space<vmem>>, vector<8x32xbf16>
      %c0_15 = arith.constant 0 : index
      %c0_16 = arith.constant 0 : index
      %38 = vector.load %arg1[%c0_15, %c0_16] : memref<32x32xbf16, #tpu.memory_space<vmem>>, vector<32x32xbf16>
      %cst_17 = arith.constant dense<0.000000e+00> : vector<8x32xf32>
      %39 = tpu.matmul %37, %38, %cst_17 {dimension_numbers = #tpu.dot_dimension_numbers<[1], [1], [0], [0], [0, 0, 1, 0], [], []>} : vector<8x32xbf16>, vector<32x32xbf16>, vector<8x32xf32> -> vector<8x32xf32>
      %40 = arith.truncf %39 : vector<8x32xf32> to vector<8x32xbf16>
      %c0_18 = arith.constant 0 : index
      %c0_19 = arith.constant 0 : index
      %41 = vector.load %arg2[%c0_18, %c0_19] : memref<32x32xbf16, #tpu.memory_space<vmem>>, vector<32x32xbf16>
      %cst_20 = arith.constant dense<0.000000e+00> : vector<8x32xf32>
      %42 = tpu.matmul %37, %41, %cst_20 {dimension_numbers = #tpu.dot_dimension_numbers<[1], [1], [0], [0], [0, 0, 1, 0], [], []>} : vector<8x32xbf16>, vector<32x32xbf16>, vector<8x32xf32> -> vector<8x32xf32>
      %43 = arith.truncf %42 : vector<8x32xf32> to vector<8x32xbf16>
      %c0_21 = arith.constant 0 : index
      %c0_22 = arith.constant 0 : index
      %44 = vector.load %arg3[%c0_21, %c0_22] : memref<32x32xbf16, #tpu.memory_space<vmem>>, vector<32x32xbf16>
      %cst_23 = arith.constant dense<0.000000e+00> : vector<8x32xf32>
      %45 = tpu.matmul %37, %44, %cst_23 {dimension_numbers = #tpu.dot_dimension_numbers<[1], [1], [0], [0], [0, 0, 1, 0], [], []>} : vector<8x32xbf16>, vector<32x32xbf16>, vector<8x32xf32> -> vector<8x32xf32>
      %46 = arith.truncf %45 : vector<8x32xf32> to vector<8x32xbf16>
      %47 = vector.extract_strided_slice %40 {offsets = [0, 0], sizes = [8, 8], strides = [1, 1]} : vector<8x32xbf16> to vector<8x8xbf16>
      %c0_24 = arith.constant 0 : index
      %c0_25 = arith.constant 0 : index
      %c0_26 = arith.constant 0 : index
      %48 = vector.load %arg7[%c0_24, %c0_25, %c0_26] : memref<4x8x8xbf16, #tpu.memory_space<vmem>>, vector<1x8x8xbf16>
      %49 = vector.shape_cast %48 : vector<1x8x8xbf16> to vector<8x8xbf16>
      %50 = vector.shape_cast %47 : vector<8x8xbf16> to vector<1x8x8xbf16>
      tpu.vector_store %arg7[%c0_24, %c0_25, %c0_26], %50 {strides = array<i32>} : memref<4x8x8xbf16, #tpu.memory_space<vmem>>, vector<1x8x8xbf16>,
      %51 = vector.extract_strided_slice %43 {offsets = [0, 0], sizes = [8, 8], strides = [1, 1]} : vector<8x32xbf16> to vector<8x8xbf16>
      %c0_27 = arith.constant 0 : index
      %c0_28 = arith.constant 0 : index
      %c0_29 = arith.constant 0 : index
      %52 = vector.load %arg8[%c0_27, %c0_28, %c0_29] : memref<4x8x8xbf16, #tpu.memory_space<vmem>>, vector<1x8x8xbf16>
      %53 = vector.shape_cast %52 : vector<1x8x8xbf16> to vector<8x8xbf16>
      %54 = vector.shape_cast %51 : vector<8x8xbf16> to vector<1x8x8xbf16>
      tpu.vector_store %arg8[%c0_27, %c0_28, %c0_29], %54 {strides = array<i32>} : memref<4x8x8xbf16, #tpu.memory_space<vmem>>, vector<1x8x8xbf16>,
      %55 = vector.extract_strided_slice %46 {offsets = [0, 0], sizes = [8, 8], strides = [1, 1]} : vector<8x32xbf16> to vector<8x8xbf16>
      %c0_30 = arith.constant 0 : index
      %c0_31 = arith.constant 0 : index
      %c0_32 = arith.constant 0 : index
      %56 = vector.load %arg9[%c0_30, %c0_31, %c0_32] : memref<4x8x8xbf16, #tpu.memory_space<vmem>>, vector<1x8x8xbf16>
      %57 = vector.shape_cast %56 : vector<1x8x8xbf16> to vector<8x8xbf16>
      %58 = vector.shape_cast %55 : vector<8x8xbf16> to vector<1x8x8xbf16>
      tpu.vector_store %arg9[%c0_30, %c0_31, %c0_32], %58 {strides = array<i32>} : memref<4x8x8xbf16, #tpu.memory_space<vmem>>, vector<1x8x8xbf16>,
      %59 = vector.extract_strided_slice %40 {offsets = [0, 8], sizes = [8, 8], strides = [1, 1]} : vector<8x32xbf16> to vector<8x8xbf16>
      %c1 = arith.constant 1 : index
      %c0_33 = arith.constant 0 : index
      %c0_34 = arith.constant 0 : index
      %60 = vector.load %arg7[%c1, %c0_33, %c0_34] : memref<4x8x8xbf16, #tpu.memory_space<vmem>>, vector<1x8x8xbf16>
      %61 = vector.shape_cast %60 : vector<1x8x8xbf16> to vector<8x8xbf16>
      %62 = vector.shape_cast %59 : vector<8x8xbf16> to vector<1x8x8xbf16>
      tpu.vector_store %arg7[%c1, %c0_33, %c0_34], %62 {strides = array<i32>} : memref<4x8x8xbf16, #tpu.memory_space<vmem>>, vector<1x8x8xbf16>,
      %63 = vector.extract_strided_slice %43 {offsets = [0, 8], sizes = [8, 8], strides = [1, 1]} : vector<8x32xbf16> to vector<8x8xbf16>
      %c1_35 = arith.constant 1 : index
      %c0_36 = arith.constant 0 : index
      %c0_37 = arith.constant 0 : index
      %64 = vector.load %arg8[%c1_35, %c0_36, %c0_37] : memref<4x8x8xbf16, #tpu.memory_space<vmem>>, vector<1x8x8xbf16>
      %65 = vector.shape_cast %64 : vector<1x8x8xbf16> to vector<8x8xbf16>
      %66 = vector.shape_cast %63 : vector<8x8xbf16> to vector<1x8x8xbf16>
      tpu.vector_store %arg8[%c1_35, %c0_36, %c0_37], %66 {strides = array<i32>} : memref<4x8x8xbf16, #tpu.memory_space<vmem>>, vector<1x8x8xbf16>,
      %67 = vector.extract_strided_slice %46 {offsets = [0, 8], sizes = [8, 8], strides = [1, 1]} : vector<8x32xbf16> to vector<8x8xbf16>
      %c1_38 = arith.constant 1 : index
      %c0_39 = arith.constant 0 : index
      %c0_40 = arith.constant 0 : index
      %68 = vector.load %arg9[%c1_38, %c0_39, %c0_40] : memref<4x8x8xbf16, #tpu.memory_space<vmem>>, vector<1x8x8xbf16>
      %69 = vector.shape_cast %68 : vector<1x8x8xbf16> to vector<8x8xbf16>
      %70 = vector.shape_cast %67 : vector<8x8xbf16> to vector<1x8x8xbf16>
      tpu.vector_store %arg9[%c1_38, %c0_39, %c0_40], %70 {strides = array<i32>} : memref<4x8x8xbf16, #tpu.memory_space<vmem>>, vector<1x8x8xbf16>,
      %71 = vector.extract_strided_slice %40 {offsets = [0, 16], sizes = [8, 8], strides = [1, 1]} : vector<8x32xbf16> to vector<8x8xbf16>
      %c2 = arith.constant 2 : index
      %c0_41 = arith.constant 0 : index
      %c0_42 = arith.constant 0 : index
      %72 = vector.load %arg7[%c2, %c0_41, %c0_42] : memref<4x8x8xbf16, #tpu.memory_space<vmem>>, vector<1x8x8xbf16>
      %73 = vector.shape_cast %72 : vector<1x8x8xbf16> to vector<8x8xbf16>
      %74 = vector.shape_cast %71 : vector<8x8xbf16> to vector<1x8x8xbf16>
      tpu.vector_store %arg7[%c2, %c0_41, %c0_42], %74 {strides = array<i32>} : memref<4x8x8xbf16, #tpu.memory_space<vmem>>, vector<1x8x8xbf16>,
      %75 = vector.extract_strided_slice %43 {offsets = [0, 16], sizes = [8, 8], strides = [1, 1]} : vector<8x32xbf16> to vector<8x8xbf16>
      %c2_43 = arith.constant 2 : index
      %c0_44 = arith.constant 0 : index
      %c0_45 = arith.constant 0 : index
      %76 = vector.load %arg8[%c2_43, %c0_44, %c0_45] : memref<4x8x8xbf16, #tpu.memory_space<vmem>>, vector<1x8x8xbf16>
      %77 = vector.shape_cast %76 : vector<1x8x8xbf16> to vector<8x8xbf16>
      %78 = vector.shape_cast %75 : vector<8x8xbf16> to vector<1x8x8xbf16>
      tpu.vector_store %arg8[%c2_43, %c0_44, %c0_45], %78 {strides = array<i32>} : memref<4x8x8xbf16, #tpu.memory_space<vmem>>, vector<1x8x8xbf16>,
      %79 = vector.extract_strided_slice %46 {offsets = [0, 16], sizes = [8, 8], strides = [1, 1]} : vector<8x32xbf16> to vector<8x8xbf16>
      %c2_46 = arith.constant 2 : index
      %c0_47 = arith.constant 0 : index
      %c0_48 = arith.constant 0 : index
      %80 = vector.load %arg9[%c2_46, %c0_47, %c0_48] : memref<4x8x8xbf16, #tpu.memory_space<vmem>>, vector<1x8x8xbf16>
      %81 = vector.shape_cast %80 : vector<1x8x8xbf16> to vector<8x8xbf16>
      %82 = vector.shape_cast %79 : vector<8x8xbf16> to vector<1x8x8xbf16>
      tpu.vector_store %arg9[%c2_46, %c0_47, %c0_48], %82 {strides = array<i32>} : memref<4x8x8xbf16, #tpu.memory_space<vmem>>, vector<1x8x8xbf16>,
      %83 = vector.extract_strided_slice %40 {offsets = [0, 24], sizes = [8, 8], strides = [1, 1]} : vector<8x32xbf16> to vector<8x8xbf16>
      %c3 = arith.constant 3 : index
      %c0_49 = arith.constant 0 : index
      %c0_50 = arith.constant 0 : index
      %84 = vector.load %arg7[%c3, %c0_49, %c0_50] : memref<4x8x8xbf16, #tpu.memory_space<vmem>>, vector<1x8x8xbf16>
      %85 = vector.shape_cast %84 : vector<1x8x8xbf16> to vector<8x8xbf16>
      %86 = vector.shape_cast %83 : vector<8x8xbf16> to vector<1x8x8xbf16>
      tpu.vector_store %arg7[%c3, %c0_49, %c0_50], %86 {strides = array<i32>} : memref<4x8x8xbf16, #tpu.memory_space<vmem>>, vector<1x8x8xbf16>,
      %87 = vector.extract_strided_slice %43 {offsets = [0, 24], sizes = [8, 8], strides = [1, 1]} : vector<8x32xbf16> to vector<8x8xbf16>
      %c3_51 = arith.constant 3 : index
      %c0_52 = arith.constant 0 : index
      %c0_53 = arith.constant 0 : index
      %88 = vector.load %arg8[%c3_51, %c0_52, %c0_53] : memref<4x8x8xbf16, #tpu.memory_space<vmem>>, vector<1x8x8xbf16>
      %89 = vector.shape_cast %88 : vector<1x8x8xbf16> to vector<8x8xbf16>
      %90 = vector.shape_cast %87 : vector<8x8xbf16> to vector<1x8x8xbf16>
      tpu.vector_store %arg8[%c3_51, %c0_52, %c0_53], %90 {strides = array<i32>} : memref<4x8x8xbf16, #tpu.memory_space<vmem>>, vector<1x8x8xbf16>,
      %91 = vector.extract_strided_slice %46 {offsets = [0, 24], sizes = [8, 8], strides = [1, 1]} : vector<8x32xbf16> to vector<8x8xbf16>
      %c3_54 = arith.constant 3 : index
      %c0_55 = arith.constant 0 : index
      %c0_56 = arith.constant 0 : index
      %92 = vector.load %arg9[%c3_54, %c0_55, %c0_56] : memref<4x8x8xbf16, #tpu.memory_space<vmem>>, vector<1x8x8xbf16>
      %93 = vector.shape_cast %92 : vector<1x8x8xbf16> to vector<8x8xbf16>
      %94 = vector.shape_cast %91 : vector<8x8xbf16> to vector<1x8x8xbf16>
      tpu.vector_store %arg9[%c3_54, %c0_55, %c0_56], %94 {strides = array<i32>} : memref<4x8x8xbf16, #tpu.memory_space<vmem>>, vector<1x8x8xbf16>,
    } else {
    }
    %3 = arith.index_cast %arg0 : i32 to index
    %c0 = arith.constant 0 : index
    %c0_1 = arith.constant 0 : index
    %4 = vector.load %arg7[%3, %c0, %c0_1] : memref<4x8x8xbf16, #tpu.memory_space<vmem>>, vector<1x8x8xbf16>
    %5 = vector.shape_cast %4 : vector<1x8x8xbf16> to vector<8x8xbf16>
    %6 = arith.index_cast %arg0 : i32 to index
    %c0_2 = arith.constant 0 : index
    %c0_3 = arith.constant 0 : index
    %7 = vector.load %arg8[%6, %c0_2, %c0_3] : memref<4x8x8xbf16, #tpu.memory_space<vmem>>, vector<1x8x8xbf16>
    %8 = vector.shape_cast %7 : vector<1x8x8xbf16> to vector<8x8xbf16>
    %9 = arith.index_cast %arg0 : i32 to index
    %c0_4 = arith.constant 0 : index
    %c0_5 = arith.constant 0 : index
    %10 = vector.load %arg9[%9, %c0_4, %c0_5] : memref<4x8x8xbf16, #tpu.memory_space<vmem>>, vector<1x8x8xbf16>
    %11 = vector.shape_cast %10 : vector<1x8x8xbf16> to vector<8x8xbf16>
    %cst = arith.constant dense<0.000000e+00> : vector<8x8xf32>
    %12 = tpu.matmul %5, %8, %cst {dimension_numbers = #tpu.dot_dimension_numbers<[1], [1], [0], [0], [0, 0, 1, 0], [], []>} : vector<8x8xbf16>, vector<8x8xbf16>, vector<8x8xf32> -> vector<8x8xf32>
    %13 = tpu.iota {dimensions = array<i32: 0>} : vector<8x8xi32>
    %14 = tpu.iota {dimensions = array<i32: 1>} : vector<8x8xi32>
    %15 = arith.cmpi sge, %14, %13 : vector<8x8xi32>
    %cst_6 = arith.constant 0xFF800000 : f32
    %16 = vector.broadcast %cst_6 : f32 to vector<8x8xf32>
    %17 = arith.select %15, %12, %16 : vector<8x8xi1>, vector<8x8xf32>
    %cst_7 = arith.constant dense<0xFF800000> : vector<8xf32>
    %18 = vector.multi_reduction <maximumf>, %17, %cst_7 [1] : vector<8x8xf32> to vector<8xf32>
    %19 = vector.shape_cast %18 : vector<8xf32> to vector<8x1xf32>
    %20 = vector.broadcast %19 : vector<8x1xf32> to vector<8x8xf32>
    %21 = arith.subf %17, %20 : vector<8x8xf32>
    %22 = math.exp %21 : vector<8x8xf32>
    %cst_8 = arith.constant dense<0.000000e+00> : vector<8xf32>
    %23 = vector.multi_reduction <add>, %22, %cst_8 [1] : vector<8x8xf32> to vector<8xf32>
    %24 = vector.shape_cast %23 : vector<8xf32> to vector<8x1xf32>
    %25 = tpu.reciprocal %24 {approx = true} : vector<8x1xf32> -> vector<8x1xf32>
    %26 = vector.broadcast %25 : vector<8x1xf32> to vector<8x8xf32>
    %27 = arith.mulf %22, %26 : vector<8x8xf32>
    %28 = arith.truncf %27 : vector<8x8xf32> to vector<8x8xbf16>
    %cst_9 = arith.constant dense<0.000000e+00> : vector<8x8xf32>
    %29 = tpu.matmul %28, %11, %cst_9 {dimension_numbers = #tpu.dot_dimension_numbers<[1], [0], [0], [1], [0, 0, 1, 1], [], []>} : vector<8x8xbf16>, vector<8x8xbf16>, vector<8x8xf32> -> vector<8x8xf32>
    %30 = arith.index_cast %arg0 : i32 to index
    %c0_10 = arith.constant 0 : index
    %c0_11 = arith.constant 0 : index
    %31 = vector.load %arg10[%30, %c0_10, %c0_11] : memref<4x8x8xf32, #tpu.memory_space<vmem>>, vector<1x8x8xf32>
    %32 = vector.shape_cast %31 : vector<1x8x8xf32> to vector<8x8xf32>
    %33 = vector.shape_cast %29 : vector<8x8xf32> to vector<1x8x8xf32>
    tpu.vector_store %arg10[%30, %c0_10, %c0_11], %33 {strides = array<i32>} : memref<4x8x8xf32, #tpu.memory_space<vmem>>, vector<1x8x8xf32>,
    %c3_i32 = arith.constant 3 : i32
    %34 = arith.cmpi eq, %arg0, %c3_i32 : i32
    %35 = arith.extui %34 : i1 to i32
    %c0_i32_12 = arith.constant 0 : i32
    %36 = arith.cmpi ne, %35, %c0_i32_12 : i32
    scf.if %36 {
      %c0_13 = arith.constant 0 : index
      %c0_14 = arith.constant 0 : index
      %c0_15 = arith.constant 0 : index
      %37 = vector.load %arg10[%c0_13, %c0_14, %c0_15] : memref<4x8x8xf32, #tpu.memory_space<vmem>>, vector<4x8x8xf32>
      %38 = vector.shape_cast %37 : vector<4x8x8xf32> to vector<32x8xf32>
      %39 = arith.truncf %38 : vector<32x8xf32> to vector<32x8xbf16>
      %c0_16 = arith.constant 0 : index
      %c0_17 = arith.constant 0 : index
      %40 = vector.load %arg5[%c0_16, %c0_17] : memref<32x32xbf16, #tpu.memory_space<vmem>>, vector<32x32xbf16>
      %cst_18 = arith.constant dense<0.000000e+00> : vector<32x8xf32>
      %41 = tpu.matmul %40, %39, %cst_18 {dimension_numbers = #tpu.dot_dimension_numbers<[1], [0], [0], [1], [0, 0, 1, 1], [], []>} : vector<32x32xbf16>, vector<32x8xbf16>, vector<32x8xf32> -> vector<32x8xf32>
      %c0_19 = arith.constant 0 : index
      %c0_20 = arith.constant 0 : index
      %42 = vector.load %arg6[%c0_19, %c0_20] : memref<32x8xf32, #tpu.memory_space<vmem>>, vector<32x8xf32>
      tpu.vector_store %arg6[%c0_19, %c0_20], %41 {strides = array<i32>} : memref<32x8xf32, #tpu.memory_space<vmem>>, vector<32x8xf32>,
    } else {
    }
    return
  }
  func.func @transform_0(%arg0: i32) -> (i32, i32) {
    %c0_i32 = arith.constant 0 : i32
    %c0_i32_0 = arith.constant 0 : i32
    %c0_i32_1 = arith.constant 0 : i32
    return %c0_i32, %c0_i32_0 : i32, i32
  }
  func.func @transform_1(%arg0: i32) -> (i32, i32) {
    %c0_i32 = arith.constant 0 : i32
    %c0_i32_0 = arith.constant 0 : i32
    %c0_i32_1 = arith.constant 0 : i32
    return %c0_i32, %c0_i32_0 : i32, i32
  }
  func.func @transform_2(%arg0: i32) -> (i32, i32) {
    %c0_i32 = arith.constant 0 : i32
    %c0_i32_0 = arith.constant 0 : i32
    %c0_i32_1 = arith.constant 0 : i32
    return %c0_i32, %c0_i32_0 : i32, i32
  }
  func.func @transform_3(%arg0: i32) -> (i32, i32) {
    %c0_i32 = arith.constant 0 : i32
    %c0_i32_0 = arith.constant 0 : i32
    %c0_i32_1 = arith.constant 0 : i32
    return %c0_i32, %c0_i32_0 : i32, i32
  }
  func.func @transform_4(%arg0: i32) -> (i32, i32) {
    %c0_i32 = arith.constant 0 : i32
    %c0_i32_0 = arith.constant 0 : i32
    %c0_i32_1 = arith.constant 0 : i32
    return %c0_i32, %c0_i32_0 : i32, i32
  }
  func.func @transform_5(%arg0: i32) -> (i32, i32) {
    %c0_i32 = arith.constant 0 : i32
    %c0_i32_0 = arith.constant 0 : i32
    %c0_i32_1 = arith.constant 0 : i32
    return %c0_i32, %c0_i32_0 : i32, i32
  }
}

</mosaic_0001>

<bundles_post_ra>
// kernel: tpu_custom_call.1
= control target key start
LH: loop header
LB: loop body
LE: loop exit
PB: predicated region body
PF: predicated region fallthrough
CT: control target
= control target key end

     0   :  { %10 = vsyncpa [#allocation7], 0  ;;  %s1333_s0 = inlined_call_operand.hbm [shape: bf16[32,32], index: 0, kind: input, shape index: {}]   ;;  %s1334_s1 = inlined_call_operand.hbm [shape: bf16[32,32], index: 1, kind: input, shape index: {}]   ;;  %s1335_s2 = inlined_call_operand.hbm [shape: bf16[32,32], index: 2, kind: input, shape index: {}]   ;;  %s1336_s3 = inlined_call_operand.vmem [shape: bf16[8,32], index: 3, kind: input, shape index: {}]   ;;  %s1337_s4 = inlined_call_operand.hbm [shape: bf16[32,32], index: 4, kind: input, shape index: {}]   ;;  %s1338_s5 = inlined_call_operand.vmem [shape: f32[32,8], index: 5, kind: output, shape index: {}]  }
   0x1   :  { %11 = vsyncpa [#allocation9], 0 }
   0x2   :  { %12 = vsyncpa [#allocation12], 0  ;;  %s1119_s18 = smov 0  }
   0x3 LB: > { %s1125_s19 = sadd.s32 4294967295, %s1074_s18   ;;  %p774_p0 = scmp.ge.s32.totalorder %s1074_s18, 1  ;;  %s1074_s18 = sphi %s1119_s18, %s18_s18  }
   0x4   : > { %p149_p1 = scmp.lt.s32.totalorder %s1074_s18, 5  ;;  %p1339_p3 = scmp.eq.s32.totalorder %s1125_s19, 0 }
   0x5   : > { %s1076_s21 = smov [#allocation8]   ;;  %s1077_s23 = smov [#allocation6]  }
   0x6   : > { %p1131_p4 = pnand %p774_p0, %p149_p1  ;;  %s174_s22 = sshll.u32 %s1076_s21, 4  ;;  %s1135_s22 = int_to_ptr.vmem [resolvable:$true] %s174_s22 }
   0x7   : > { %s161_s24 = sshll.u32 %s1077_s23, 4  ;;  %s1078_s26 = smov [#allocation10]   ;;  %s1139_s24 = int_to_ptr.vmem [resolvable:$true] %s161_s24 }
   0x8   : > { %s1341_s20 = scalar_select %p1131_p4, 1, 0 }
   0x9   : > { %p890_p5 = pneg %p1131_p4  ;;  %s187_s27 = sshll.u32 %s1078_s26, 4  ;;  %s1147_s27 = int_to_ptr.vmem [resolvable:$true] %s187_s27 }
   0xa   : > { %s1079_s28 = smov [#allocation11]   ;;  %s944_s7 = scalar_lea.hbm %s1334_s1, 256 }
   0xb   : > { %p1143_p6 = pnand %p1339_p3, %p890_p5  ;;  %s1149_s29 = sshll.u32 %s1079_s28, 4  ;;  %s204_s29 = int_to_ptr.vmem [resolvable:$true] %s1149_s29 }
   0xc   : > { %p945_p7 = scmp.ne.s32.totalorder %s1334_s1, %s944_s7  ;;  %p951_p11 = scmp.lt.u32.totalorder %s944_s7, %s1334_s1 }
   0xd   : > { %p1159_p8 = pneg %p1143_p6 }
   0xf   : > { %p947_p9 = pnand %p1159_p8, %p945_p7 }
  0x11   : > { %p948_p10 = pneg %p947_p9 }
  0x13   : > { %p953_p12 = pnand %p951_p11, %p948_p10 }
  0x15   : > { %956 = shalt.err (!%p953_p12)
}
  0x16   : > { %s957_s13 = scalar_lea.vmem %s1135_s22, 256  ;;  %p965_p5 = scmp.lt.s32.totalorder %s1135_s22, %s1135_s22 }
  0x17   : > { %p958_p13 = scmp.ne.s32.totalorder %s1135_s22, %s957_s13  ;;  %p966_p2 = scmp.lt.s32.totalorder %s957_s13, %s957_s13 }
  0x19   : > { %p960_p0 = pnand %p958_p13, %p1159_p8  ;;  %p967_p7 = por %p966_p2, %p965_p5 }
  0x1b   : > { %p961_p1 = pneg %p960_p0 }
  0x1d   : > { %p968_p9 = pnand %p967_p7, %p961_p1 }
  0x1f   : > { %971 = shalt.err (!%p968_p9)
}
  0x20   : > { %s1080_s14 = smov 64   ;;  %s1081_s15 = smov 4  }
  0x21   : > { %896 = dma.hbm_to_vmem [thread:$0]  (!%p1143_p6), %s1334_s1, 256, %s1135_s22, [#allocation9], %s1080_s14, %s1080_s14, %s1081_s15  }
  0x22   : > { %s972_s26 = scalar_lea.hbm %s1333_s0, 256 }
  0x23   : > { %p973_p2 = scmp.ne.s32.totalorder %s1333_s0, %s972_s26  ;;  %p979_p12 = scmp.lt.u32.totalorder %s972_s26, %s1333_s0 }
  0x25   : > { %p975_p10 = pnand %p973_p2, %p1159_p8 }
  0x27   : > { %p976_p11 = pneg %p975_p10 }
  0x29   : > { %p981_p13 = pnand %p979_p12, %p976_p11 }
  0x2b   : > { %984 = shalt.err (!%p981_p13)
}
  0x2c   : > { %s985_s22 = scalar_lea.vmem %s1139_s24, 256  ;;  %p993_p7 = scmp.lt.s32.totalorder %s1139_s24, %s1139_s24 }
  0x2d   : > { %p986_p0 = scmp.ne.s32.totalorder %s1139_s24, %s985_s22  ;;  %p994_p9 = scmp.lt.s32.totalorder %s985_s22, %s985_s22 }
  0x2f   : > { %p988_p1 = pnand %p986_p0, %p1159_p8  ;;  %p995_p2 = por %p994_p9, %p993_p7 }
  0x31   : > { %p989_p5 = pneg %p988_p1 }
  0x33   : > { %p996_p10 = pnand %p995_p2, %p989_p5 }
  0x35   : > { %999 = shalt.err (!%p996_p10)
}
  0x36   : > { %893 = dma.hbm_to_vmem [thread:$0]  (!%p1143_p6), %s1333_s0, 256, %s1139_s24, [#allocation7], %s1080_s14, %s1080_s14, %s1081_s15  }
  0x37   : > { %s1000_s13 = scalar_lea.hbm %s1335_s2, 256 }
  0x38   : > { %p1001_p11 = scmp.ne.s32.totalorder %s1335_s2, %s1000_s13  ;;  %p1007_p0 = scmp.lt.u32.totalorder %s1000_s13, %s1335_s2 }
  0x3a   : > { %p1003_p12 = pnand %p1001_p11, %p1159_p8 }
  0x3c   : > { %p1004_p13 = pneg %p1003_p12 }
  0x3e   : > { %p1009_p1 = pnand %p1007_p0, %p1004_p13 }
  0x40   : > { %1012 = shalt.err (!%p1009_p1)
}
  0x41   : > { %s1013_s24 = scalar_lea.vmem %s1147_s27, 256  ;;  %p1021_p2 = scmp.lt.s32.totalorder %s1147_s27, %s1147_s27 }
  0x42   : > { %p1014_p5 = scmp.ne.s32.totalorder %s1147_s27, %s1013_s24  ;;  %p1022_p10 = scmp.lt.s32.totalorder %s1013_s24, %s1013_s24 }
  0x44   : > { %p1016_p7 = pnand %p1014_p5, %p1159_p8  ;;  %p1023_p11 = por %p1022_p10, %p1021_p2 }
  0x46   : > { %p1017_p9 = pneg %p1016_p7 }
  0x48   : > { %p1024_p12 = pnand %p1023_p11, %p1017_p9 }
  0x4a   : > { %1027 = shalt.err (!%p1024_p12)
}
  0x4b   : > { %899 = dma.hbm_to_vmem [thread:$0]  (!%p1143_p6), %s1335_s2, 256, %s1147_s27, [#allocation9], %s1080_s14, %s1080_s14, %s1081_s15  }
  0x4c   : > { %s1028_s7 = scalar_lea.hbm %s1337_s4, 256 }
  0x4d   : > { %p1029_p13 = scmp.ne.s32.totalorder %s1337_s4, %s1028_s7  ;;  %p1035_p5 = scmp.lt.u32.totalorder %s1028_s7, %s1337_s4 }
  0x4f   : > { %p1031_p0 = pnand %p1029_p13, %p1159_p8 }
  0x51   : > { %p1032_p1 = pneg %p1031_p0 }
  0x53   : > { %p1037_p7 = pnand %p1035_p5, %p1032_p1 }
  0x55   : > { %1040 = shalt.err (!%p1037_p7)
}
  0x56   : > { %s1041_s12 = scalar_lea.vmem %s204_s29, 256  ;;  %p1049_p11 = scmp.lt.s32.totalorder %s204_s29, %s204_s29 }
  0x57   : > { %p1042_p9 = scmp.ne.s32.totalorder %s204_s29, %s1041_s12  ;;  %p1050_p12 = scmp.lt.s32.totalorder %s1041_s12, %s1041_s12 }
  0x59   : > { %p1044_p2 = pnand %p1042_p9, %p1159_p8  ;;  %p1051_p3 = por %p1050_p12, %p1049_p11 }
  0x5b   : > { %p1045_p10 = pneg %p1044_p2 }
  0x5d   : > { %p1052_p4 = pnand %p1051_p3, %p1045_p10 }
  0x5f   : > { %1055 = shalt.err (!%p1052_p4)
}
  0x60   : > { %902 = dma.hbm_to_vmem [thread:$0]  (!%p1143_p6), %s1337_s4, 256, %s204_s29, [#allocation12], %s1080_s14, %s1080_s14, %s1081_s15  }
  0x61   : > { %p1344_p13 = scmp.ne.s32.totalorder %s1341_s20, 0 }
  0x62   : > { %p1345_p8 = scmp.eq.s32.totalorder (!%p1344_p13), %s1125_s19, 0 }
  0x63   : > { %219 = sbr.rel (%p1344_p13) target bundleno = 1476 (0x5c4), region = 40 }
  0x6a   : > { %1061 = dma.done.wait (%p1345_p8), [#allocation7], 256   ;;  %p1346_p0 = pmov %p1345_p8 }
  0x6c   : > { %1063 = vsyncadd (%p1346_p0), [#allocation7], 4294967040  ;;  %p1347_p3 = pmov %p1346_p0 }
  0x6d   : > { %p1348_p4 = pmov %p1346_p0 }
  0x6e   : > { %1065 = dma.done.wait (%p1347_p3), [#allocation9], 512  }
  0x6f   : > { %1067 = vsyncadd (%p1348_p4), [#allocation9], 4294966784  ;;  %p1349_p1 = pmov %p1346_p0 }
  0x70   : > { %p1350_p6 = pmov %p1346_p0 }
  0x71   : > { %1069 = dma.done.wait (%p1349_p1), [#allocation12], 256  }
  0x72   : > { %1071 = vsyncadd (%p1350_p6), [#allocation12], 4294967040  ;;  %p1351_p5 = scmp.ne.s32.totalorder %s1125_s19, 0 }
  0x73   : > { %v932_v0 = vld [vmem:[#allocation6] sm:$0xff] (!%p1351_p5)   ;;  %v1082_v1 = vmov (!%p1351_p5), 0.0   ;;  %vm269_vm0 = vcmask (!%p1351_p5), 261120   ;;  %v933_v2 = vld [vmem:[#allocation8] sm:$0xff] (!%p1351_p5)   ;;  %v934_v5 = vld [vmem:[#allocation6 + $0x8] sm:$0xff] (!%p1351_p5)   ;;  %vm1083_vm1 = vmmov (!%p1351_p5), 0  }
  0x74   : > { %253 = sbr.rel (%p1351_p5) target bundleno = 486 (0x1e6), region = 60  ;;  %830 = vmatprep.subr.bf16.mxu0 (!%p1351_p5), %v1082_v1  ;;  %838 = vmatprep.subr.bf16.mxu1 (!%p1351_p5), %v1082_v1  ;;  %v274_v3 = vsel (!%p1351_p5), %vm269_vm0, %v932_v0, 0  ;;  %v335_v4 = vsel (!%p1351_p5), %vm269_vm0, %v933_v2, 0  ;;  %v935_v6 = vld [vmem:[#allocation8 + $0x8] sm:$0xff] (!%p1351_p5)   ;;  %v277_v7 = vsel (!%p1351_p5), %vm269_vm0, %v934_v5, 0  ;;  %v936_v9 = vld [vmem:[#allocation10] sm:$0xff] (!%p1351_p5)  }
  0x75   : > { %831 = vmatpush3.bf16.xpose.msra.mxu0 (!%p1351_p5), %v274_v3  ;;  %839 = vmatpush3.bf16.xpose.msra.mxu1 (!%p1351_p5), %v335_v4  ;;  %v338_v8 = vsel (!%p1351_p5), %vm269_vm0, %v935_v6, 0  ;;  %v254_v10 = vld [vmem:[%s1336_s3] sm:$0xf] (!%p1351_p5)  ;;  %v396_v11 = vsel (!%p1351_p5), %vm269_vm0, %v936_v9, 0  ;;  %v937_v12 = vld [vmem:[#allocation10 + $0x8] sm:$0xff] (!%p1351_p5)   ;;  %vm442_vm2 = vcmask (!%p1351_p5), 60416  }
  0x76   : > { %832 = vmatprep.subr.bf16.mxu0 (!%p1351_p5), %v1082_v1  ;;  %840 = vmatprep.subr.bf16.mxu1 (!%p1351_p5), %v1082_v1  ;;  %v399_v13 = vsel (!%p1351_p5), %vm269_vm0, %v937_v12, 0  ;;  %s1084_s29 = smov (!%p1351_p5), 120   ;;  %s1085_s10 = smov (!%p1351_p5), 112  }
  0x77   : > { %834 = vmatprep.mubr.msk.bf16.mxu0 (!%p1351_p5), %vm1083_vm1, %v1082_v1  ;;  %842 = vmatprep.mubr.msk.bf16.mxu1 (!%p1351_p5), %vm1083_vm1, %v1082_v1  ;;  %s1086_s14 = smov (!%p1351_p5), 104  }
  0x7d   : > { %833 = vmatpush3.bf16.xpose.msra.mxu0 %v277_v7  ;;  %841 = vmatpush3.bf16.xpose.msra.mxu1 %v338_v8 }
  0x7e   : > { %846 = vmatprep.subr.bf16.mxu0 %v1082_v1 }
  0x84   : > { %835 = vmatmul.mubr.msk.bf16.vlgmr.msra.gmra.mrb[0].mxu0 %vm269_vm0, %v254_v10  ;;  %843 = vmatmul.mubr.msk.bf16.vlgmr.msra.gmra.mrb[0].mxu1 %vm269_vm0, %v254_v10 }
  0x85   : > { %847 = vmatpush3.bf16.xpose.msra.mxu0 %v396_v11  ;;  %850 = vmatprep.mubr.msk.bf16.mxu0 %vm1083_vm1, %v1082_v1 }
  0x86   : > { %848 = vmatprep.subr.bf16.mxu0 %v1082_v1 }
  0x8d   : > { %849 = vmatpush3.bf16.xpose.msra.mxu0 %v399_v13 }
  0x94   : > { %851 = vmatmul.mubr.msk.bf16.vlgmr.msra.gmra.mrb[4].mxu0 %vm269_vm0, %v254_v10 }
 0x157   : > { %v313_v14 = vpop.f32.mrb[0].mxu0  ;;  %v374_v17 = vpop.f32.mrb[0].mxu1 }
 0x158   : > { %v319_v15 = vpack.c.bf16 %v313_v14, %v313_v14  ;;  %v836_v16 = vpop.f32.mrb[1].mxu0  ;;  %v380_v19 = vpack.c.bf16 %v374_v17, %v374_v17  ;;  %v844_v20 = vpop.f32.mrb[1].mxu1 }
 0x159   : > { %v316_v18 = vpop.f32.mrb[2].mxu0  ;;  %v377_v22 = vpop.f32.mrb[2].mxu1 }
 0x15a   : > { %443 = vst.msk [vmem:[#allocation2] sm:$0xf] %vm442_vm2, %v319_v15  ;;  %449 = vrot.lane.b32.xlu0 %v319_v15, %s1084_s29  ;;  %v837_v21 = vpop.f32.mrb[3].mxu0  ;;  %470 = vrot.lane.b32.xlu1 %v319_v15, %s1085_s10  ;;  %444 = vst.msk [vmem:[#allocation3] sm:$0xf] %vm442_vm2, %v380_v19  ;;  %v845_v23 = vpop.f32.mrb[3].mxu1 }
 0x15e   : > { %457 = vrot.lane.b32.xlu0 %v380_v19, %s1084_s29 }
 0x162   : > { %475 = vrot.lane.b32.xlu0 %v380_v19, %s1085_s10 }
 0x166   : > { %485 = vrot.lane.b32.xlu0 %v319_v15, %s1086_s14 }
 0x167   : > { %v435_v24 = vpop.f32.mrb[4].mxu0 }
 0x168   : > { %v441_v25 = vpack.c.bf16 %v435_v24, %v435_v24  ;;  %v852_v26 = vpop.f32.mrb[5].mxu0 }
 0x169   : > { %v438_v27 = vpop.f32.mrb[6].mxu0 }
 0x16a   : > { %445 = vst.msk [vmem:[#allocation4] sm:$0xf] %vm442_vm2, %v441_v25  ;;  %495 = vrot.lane.b32.xlu0 %v441_v25, %s1086_s14  ;;  %465 = vrot.lane.b32.xlu1 %v441_v25, %s1084_s29  ;;  %v853_v28 = vpop.f32.mrb[7].mxu0 }
 0x16e   : > { %480 = vrot.lane.b32.xlu1 %v441_v25, %s1085_s10 }
 0x172   : > { %490 = vrot.lane.b32.xlu1 %v380_v19, %s1086_s14 }
 0x1cc   : > { %v450_v29 = vpop.permute.xlu0 %449  ;;  %v471_v30 = vpop.permute.xlu1 %470 }
 0x1cd   : > { %453 = vst.msk [vmem:[#allocation2 + $0x4] sm:$0xf] %vm442_vm2, %v450_v29  ;;  %474 = vst.msk [vmem:[#allocation2 + $0x8] sm:$0xf] %vm442_vm2, %v471_v30 }
 0x1d0   : > { %v458_v31 = vpop.permute.xlu0 %457 }
 0x1d1   : > { %461 = vst.msk [vmem:[#allocation3 + $0x4] sm:$0xf] %vm442_vm2, %v458_v31 }
 0x1d4   : > { %v476_v32 = vpop.permute.xlu0 %475 }
 0x1d5   : > { %479 = vst.msk [vmem:[#allocation3 + $0x8] sm:$0xf] %vm442_vm2, %v476_v32 }
 0x1d8   : > { %v486_v33 = vpop.permute.xlu0 %485 }
 0x1d9   : > { %489 = vst.msk [vmem:[#allocation2 + $0xc] sm:$0xf] %vm442_vm2, %v486_v33 }
 0x1dc   : > { %v496_v34 = vpop.permute.xlu0 %495  ;;  %v466_v35 = vpop.permute.xlu1 %465 }
 0x1dd   : > { %499 = vst.msk [vmem:[#allocation4 + $0xc] sm:$0xf] %vm442_vm2, %v496_v34  ;;  %469 = vst.msk [vmem:[#allocation4 + $0x4] sm:$0xf] %vm442_vm2, %v466_v35 }
 0x1e0   : > { %v481_v36 = vpop.permute.xlu1 %480 }
 0x1e1   : > { %484 = vst.msk [vmem:[#allocation4 + $0x8] sm:$0xf] %vm442_vm2, %v481_v36 }
 0x1e4   : > { %v491_v37 = vpop.permute.xlu1 %490 }
 0x1e5   : > { %494 = vst.msk [vmem:[#allocation3 + $0xc] sm:$0xf] %vm442_vm2, %v491_v37 }
 0x1e6 PF: > { %s1301_s15 = sshll.u32 %s1125_s19, 2  ;;  %vm509_vm3 = vcmask 64512   ;;  %v1087_v38 = vmov 0.0   ;;  %vm1088_vm4 = vmmov 0   ;;  %v556_v42 = vlaneseq  ;;  %s802_s23 = sshll.u32 %s1125_s19, 3 }
 0x1e7   : > { %854 = vmatprep.subr.bf16.mxu0 %v1087_v38  ;;  %856 = vmatprep.mubr.msk.bf16.mxu0 %vm1088_vm4, %v1087_v38  ;;  %s504_s16 = scalar_lea.vmem [#allocation3], %s1301_s15  ;;  %s501_s17 = scalar_lea.vmem [#allocation2], %s1301_s15  ;;  %vm577_vm6 = vcmask 1043456  }
 0x1e8   : > { %860 = vmatprep.subr.bf16.mxu1 %v1087_v38  ;;  %862 = vmatprep.mubr.msk.bf16.mxu1 %vm1088_vm4, %v1087_v38  ;;  %v502_v41 = vld [vmem:[%s501_s17] sm:$0xf]  ;;  %v557_v43 = vshrl.u32 %v556_v42, 7  ;;  %v559_v44 = vand.u32 127, %v556_v42  ;;  %s507_s21 = scalar_lea.vmem [#allocation4], %s1301_s15  ;;  %s622_s24 = scalar_lea.vmem [#allocation5], %s802_s23 }
 0x1e9   : > { %v508_v56 = vld [vmem:[%s507_s21] sm:$0xf]  ;;  %p803_p7 = scmp.ne.s32.totalorder %s1125_s19, 3 }
 0x1ea   : > { %vm560_vm5 = vcmp.ge.s32.totalorder %v559_v44, %v557_v43  ;;  %v579_v57 = vsel %vm577_vm6, %v508_v56, 0  ;;  %vm648_vm7 = vcmask (!%p803_p7), 261120   ;;  %v942_v8 = vld [vmem:[#allocation11] sm:$0xff] (!%p803_p7)   ;;  %v943_v9 = vld [vmem:[#allocation11 + $0x8] sm:$0xff] (!%p803_p7)  }
 0x1eb   : > { %861 = vmatpush3.bf16.msra.mxu1 %v579_v57 }
 0x1ec   : > { %v505_v39 = vld [vmem:[%s504_s16] sm:$0xf] }
 0x1ed   : > { %v514_v40 = vsel %vm509_vm3, %v505_v39, 0 }
 0x1ee   : > { %855 = vmatpush3.bf16.xpose.msra.mxu0 %v514_v40 }
 0x1f5   : > { %857 = vmatmul.mubr.msk.bf16.vlgmr.msra.gmra.mrb[0].mxu0 %vm509_vm3, %v502_v41 }
 0x1f6   : > { %870 = vmatprep.mubr.msk.bf16.mxu0 (!%p803_p7), %vm648_vm7, %v942_v8 }
 0x2c8   : > { %v550_v45 = vpop.f32.mrb[0].mxu0 }
 0x2c9   : > { %v561_v46 = vsel %vm560_vm5, %v550_v45, -inf  ;;  %v858_v47 = vpop.f32.mrb[1].mxu0 }
 0x2ca   : > { %v553_v48 = vpop.f32.mrb[2].mxu0  ;;  %v562_v49 = vsel %vm509_vm3, %v561_v46, -inf }
 0x2cb   : > { %563 = vmax.xlane.f32.xlu0 %v562_v49  ;;  %v859_v50 = vpop.f32.mrb[3].mxu0 }
 0x358   : > { %v564_v51 = vpop.xlane.xlu0 %563 }
 0x359   : > { %v565_v52 = vsub.f32 %v561_v46, %v564_v51 }
 0x35b   : > { %v566_v53 = vmul.f32 1.442695, %v565_v52 }
 0x35d   : > { %938 = vpow2.f32 %v566_v53 }
 0x367   : > { %v939_v54 = vpop.eup %938 }
 0x368   : > { %v568_v55 = vsel %vm509_vm3, %v939_v54, 0.0 }
 0x369   : > { %569 = vadd.xlane.f32.xlu0 %v568_v55 }
 0x3f6   : > { %v570_v58 = vpop.xlane.xlu0 %569 }
 0x3f7   : > { %940 = vrcp.f32 %v570_v58 }
 0x401   : > { %v941_v59 = vpop.eup %940 }
 0x402   : > { %v572_v60 = vmul.f32 %v941_v59, %v939_v54 }
 0x404   : > { %v573_v61 = vpack.c.bf16 %v572_v60, %v572_v60 }
 0x406   : > { %863 = vmatmul.mubr.msk.bf16.vlgmr.msra.gmra.mrb[0].mxu1 %vm509_vm3, %v573_v61 }
 0x4d6   : > { %627 = sbr.rel (%p803_p7) target bundleno = 1476 (0x5c4), region = 64 }
 0x4d9   : > { %v615_v62 = vpop.f32.mrb[0].mxu1 }
 0x4da   : > { %623 = vst.msk [vmem:[%s622_s24] sm:$0xff] %vm509_vm3, %v615_v62  ;;  %v864_v63 = vpop.f32.mrb[1].mxu1 }
 0x4db   : > { %v618_v0 = vpop.f32.mrb[2].mxu1 }
 0x4dc   : > { %v865_v1 = vpop.f32.mrb[3].mxu1 }
 0x4e1   : > { %v628_v2 = vld [vmem:[#allocation5] sm:$0xff]  ;;  %v629_v3 = vld [vmem:[#allocation5 + $0x8] sm:$0xff]  ;;  %v630_v4 = vld [vmem:[#allocation5 + $0x10] sm:$0xff] }
 0x4e2   : > { %v632_v5 = vpack.c.bf16 %v629_v3, %v628_v2  ;;  %v631_v6 = vld [vmem:[#allocation5 + $0x18] sm:$0xff] }
 0x4e3   : > { %v633_v7 = vpack.c.bf16 %v631_v6, %v630_v4 }
 0x4e4   : > { %866 = vmatprep.subr.bf16.mxu0 %v632_v5 }
 0x4e5   : > { %867 = vmatpush3.bf16.msra.mxu0 %v632_v5 }
 0x4e6   : > { %868 = vmatprep.subr.bf16.mxu0 %v633_v7 }
 0x4e9   : > { %869 = vmatpush3.bf16.msra.mxu0 %v633_v7 }
 0x4ec   : > { %871 = vmatmul.mubr.msk.bf16.vlgmr.msra.gmra.mrb[0].mxu0 %vm648_vm7, %v943_v9 }
 0x5bf   : > { %v872_v10 = vpop.f32.mrb[0].mxu0 }
 0x5c0   : > { %706 = vst.msk [vmem:[%s1338_s5 + $0x10] sm:$0xff] %vm509_vm3, %v872_v10  ;;  %v689_v11 = vpop.f32.mrb[1].mxu0 }
 0x5c1   : > { %704 = vst.msk [vmem:[%s1338_s5] sm:$0xff] %vm509_vm3, %v689_v11  ;;  %v873_v12 = vpop.f32.mrb[2].mxu0 }
 0x5c2   : > { %707 = vst.msk [vmem:[%s1338_s5 + $0x18] sm:$0xff] %vm509_vm3, %v873_v12  ;;  %v692_v13 = vpop.f32.mrb[3].mxu0 }
 0x5c3   : > { %705 = vst.msk [vmem:[%s1338_s5 + $0x8] sm:$0xff] %vm509_vm3, %v692_v13 }
 0x5c4 PF: > { %s18_s18 = sadd.s32 1, %s1074_s18  }
 0x5c5   : > { %p15_p9 = scmp.ge.s32.totalorder %s18_s18, 6  }
 0x5c7   :  { %17 = sbr.rel (!%p15_p9) target bundleno = 3 (0x3), region = 101 }
 0x5ce   :  { %719 = vsyncpa [#allocation7], 1 }
 0x5cf   :  { %721 = vsyncpa [#allocation7 + $0x1], 1 }
 0x5d0   :  { %722 = vsyncpa [#allocation9], 1 }
 0x5d1   :  { %723 = vsyncpa [#allocation12], 1 }

</bundles_post_ra>
